<compile_context>
chip_gen: v6e
topology: v6e:2x2x1
jax: 0.10.0
libtpu: 0.0.40
codegen_flags: <defaults>
</compile_context>

<pallas_src>
import jax
import jax.numpy as jnp
from jax.experimental import pallas as pl
from jax.experimental.pallas import tpu as pltpu

_LANE = 128
_MAX_BLOCK_ROWS = 1024  # ~0.5 MiB per f32 stream; roofline plateaus here.


def _make_kernel(cmp_dtype):
    cmp_is_bool = jnp.dtype(cmp_dtype) == jnp.dtype(jnp.bool_)

    def kernel(x_ref, add_ref, sub_ref, mul_ref, div_ref, cmp_ref):
        x = x_ref[...]
        add_ref[...] = x + 5.0
        sub_ref[...] = x - 3.0
        mul_ref[...] = x * 2.0
        div_ref[...] = x * 0.25          # exact: x / 4 == x * 0.25 for floats
        cmp = x > 2.0
        if cmp_is_bool:
            cmp_ref[...] = cmp
        else:
            cmp_ref[...] = cmp.astype(cmp_dtype)

    return kernel


def _num_tensorcores() -> int:
    """Best-effort TensorCores-per-device count (megacore detection)."""
    try:
        info = pltpu.get_tpu_info()
        for attr in ("num_cores", "core_count", "num_tensorcores",
                     "tensorcores_per_chip", "cores_per_chip"):
            v = getattr(info, attr, None)
            if isinstance(v, int) and v >= 1:
                return v
    except Exception:
        pass
    try:
        kind = jax.devices()[0].device_kind.lower()
        # Megacore generations expose 2 TensorCores behind one device.
        if any(tag in kind for tag in ("v4", "v5p", "v7")):
            return 2
    except Exception:
        pass
    return 1


def _pick_block_rows(rows: int, num_cores: int) -> int:
    if rows > _MAX_BLOCK_ROWS:
        # Prefer a block size whose trailing partial block is a multiple of 32
        # rows (u8/bool min tile, covers f32's 8-row sublane) so the last grid
        # step keeps unmasked stores.
        for cand in range(_MAX_BLOCK_ROWS, _MAX_BLOCK_ROWS - 257, -32):
            rem = rows % cand
            if rem == 0 or rem % 32 == 0:
                return cand
        return _MAX_BLOCK_ROWS
    if num_cores >= 2 and rows >= 64:
        # Split into (at least) 2 blocks so both TensorCores get work; keep the
        # block a multiple of 32 rows, let pl.cdiv mask any tail.
        half = -(-rows // 2)
        return min(((half + 31) // 32) * 32, rows)
    return rows


def _run_pallas(x2d, rows, block_rows, cmp_dtype):
    dtype = x2d.dtype
    grid = (pl.cdiv(rows, block_rows),)
    spec = pl.BlockSpec((block_rows, _LANE), lambda i: (i, 0))
    out_shapes = tuple(
        [jax.ShapeDtypeStruct((rows, _LANE), dtype)] * 4
        + [jax.ShapeDtypeStruct((rows, _LANE), cmp_dtype)]
    )
    n_elems = rows * _LANE
    itemsize = jnp.dtype(dtype).itemsize
    cost = pl.CostEstimate(
        flops=5 * n_elems,
        transcendentals=0,
        bytes_accessed=n_elems * itemsize * 5 + n_elems,  # in + 4 outs + 1B cmp
    )
    return pl.pallas_call(
        _make_kernel(cmp_dtype),
        out_shape=out_shapes,
        grid_spec=pltpu.PrefetchScalarGridSpec(
            num_scalar_prefetch=0,
            grid=grid,
            in_specs=[spec],
            out_specs=[spec] * 5,
        ),
        compiler_params=pltpu.CompilerParams(
            dimension_semantics=("parallel",),
        ),
        cost_estimate=cost,
    )(x2d)


def pt_module_forward(x):
    orig_shape = x.shape
    orig_dtype = x.dtype

    if not jnp.issubdtype(orig_dtype, jnp.floating):
        # TODO(synk): integer inputs fall back to plain jnp (torch.div -> float).
        return (x + 5, x - 3, x * 2, x / 4, x > 2)

    n = x.size
    xf = jnp.ravel(x)
    n_main = (n // _LANE) * _LANE

    if n_main == 0:
        # Fewer than 128 elements: not worth a kernel launch.
        return (x + 5.0, x - 3.0, x * 2.0, x / 4.0, x > 2.0)

    rows = n_main // _LANE
    x2d = (xf if n_main == n else xf[:n_main]).reshape(rows, _LANE)

    block_rows = _pick_block_rows(rows, _num_tensorcores())

    # Prefer a native bool comparison output (no extra HBM astype pass); fall
    # back to uint8 + astype if this Mosaic version rejects bool out-refs.
    try:
        add2d, sub2d, mul2d, div2d, cmp2d = _run_pallas(
            x2d, rows, block_rows, jnp.bool_)
    except Exception:
        add2d, sub2d, mul2d, div2d, cmp_u8 = _run_pallas(
            x2d, rows, block_rows, jnp.uint8)
        cmp2d = cmp_u8.astype(jnp.bool_)  # fallback only: one extra pass

    if n_main == n:
        return (add2d.reshape(orig_shape),
                sub2d.reshape(orig_shape),
                mul2d.reshape(orig_shape),
                div2d.reshape(orig_shape),
                cmp2d.reshape(orig_shape))

    # Ragged tail (< 128 elements): plain jnp, stitched onto each output.
    tail = xf[n_main:]
    tails = (tail + 5.0, tail - 3.0, tail * 2.0, tail * 0.25, tail > 2.0)
    mains = (add2d, sub2d, mul2d, div2d, cmp2d)

    def _stitch(main2d, tail_out):
        return jnp.concatenate(
            [main2d.reshape(-1), tail_out.astype(main2d.dtype)]
        ).reshape(orig_shape)

    return tuple(_stitch(m, t) for m, t in zip(mains, tails))


if __name__ == "__main__":
    key = jax.random.PRNGKey(0)
    # NCHW input, same convention as the PyTorch module.
    x = jax.random.normal(key, (2, 4, 16, 16), dtype=jnp.float32) * 4.0

    outs = pt_module_forward(x)
    outs = jax.block_until_ready(outs)
    add_o, sub_o, mul_o, div_o, cmp_o = outs

    # Reference check in plain JAX.
    assert jnp.allclose(add_o, x + 5.0, atol=1e-6)
    assert jnp.allclose(sub_o, x - 3.0, atol=1e-6)
    assert jnp.allclose(mul_o, x * 2.0, atol=1e-6)
    assert jnp.allclose(div_o, x / 4.0, atol=1e-6)
    assert jnp.array_equal(cmp_o, x > 2.0)
    assert cmp_o.dtype == jnp.bool_

    print("KERNEL_OK")
</pallas_src>

<mosaic_0001>
module attributes {stable_mosaic.version = 11 : i64} {
  func.func @kernel(%arg0: i32, %arg1: memref<16x128xf32, #tpu.memory_space<vmem>>, %arg2: memref<16x128xf32, #tpu.memory_space<vmem>>, %arg3: memref<16x128xf32, #tpu.memory_space<vmem>>, %arg4: memref<16x128xf32, #tpu.memory_space<vmem>>, %arg5: memref<16x128xf32, #tpu.memory_space<vmem>>, %arg6: memref<16x128xi32, #tpu.memory_space<vmem>>) attributes {dimension_semantics = [#tpu.dimension_semantics<parallel>], iteration_bounds = array<i64: 1>, scalar_prefetch = 0 : i64, scratch_operands = 0 : i64, tpu.core_type = #tpu.core_type<tc>, window_params = [{transform_indices = @transform_0, window_bounds = array<i64: 16, 128>}, {transform_indices = @transform_1, window_bounds = array<i64: 16, 128>}, {transform_indices = @transform_2, window_bounds = array<i64: 16, 128>}, {transform_indices = @transform_3, window_bounds = array<i64: 16, 128>}, {transform_indices = @transform_4, window_bounds = array<i64: 16, 128>}, {transform_indices = @transform_5, window_bounds = array<i64: 16, 128>}]} {
    %c0 = arith.constant 0 : index
    %c0_0 = arith.constant 0 : index
    %0 = vector.load %arg1[%c0, %c0_0] : memref<16x128xf32, #tpu.memory_space<vmem>>, vector<16x128xf32>
    %cst = arith.constant 5.000000e+00 : f32
    %1 = vector.broadcast %cst : f32 to vector<16x128xf32>
    %2 = arith.addf %0, %1 : vector<16x128xf32>
    %c0_1 = arith.constant 0 : index
    %c0_2 = arith.constant 0 : index
    %3 = vector.load %arg2[%c0_1, %c0_2] : memref<16x128xf32, #tpu.memory_space<vmem>>, vector<16x128xf32>
    tpu.vector_store %arg2[%c0_1, %c0_2], %2 {strides = array<i32>} : memref<16x128xf32, #tpu.memory_space<vmem>>, vector<16x128xf32>,
    %cst_3 = arith.constant 3.000000e+00 : f32
    %4 = vector.broadcast %cst_3 : f32 to vector<16x128xf32>
    %5 = arith.subf %0, %4 : vector<16x128xf32>
    %c0_4 = arith.constant 0 : index
    %c0_5 = arith.constant 0 : index
    %6 = vector.load %arg3[%c0_4, %c0_5] : memref<16x128xf32, #tpu.memory_space<vmem>>, vector<16x128xf32>
    tpu.vector_store %arg3[%c0_4, %c0_5], %5 {strides = array<i32>} : memref<16x128xf32, #tpu.memory_space<vmem>>, vector<16x128xf32>,
    %cst_6 = arith.constant 2.000000e+00 : f32
    %7 = vector.broadcast %cst_6 : f32 to vector<16x128xf32>
    %8 = arith.mulf %0, %7 : vector<16x128xf32>
    %c0_7 = arith.constant 0 : index
    %c0_8 = arith.constant 0 : index
    %9 = vector.load %arg4[%c0_7, %c0_8] : memref<16x128xf32, #tpu.memory_space<vmem>>, vector<16x128xf32>
    tpu.vector_store %arg4[%c0_7, %c0_8], %8 {strides = array<i32>} : memref<16x128xf32, #tpu.memory_space<vmem>>, vector<16x128xf32>,
    %cst_9 = arith.constant 2.500000e-01 : f32
    %10 = vector.broadcast %cst_9 : f32 to vector<16x128xf32>
    %11 = arith.mulf %0, %10 : vector<16x128xf32>
    %c0_10 = arith.constant 0 : index
    %c0_11 = arith.constant 0 : index
    %12 = vector.load %arg5[%c0_10, %c0_11] : memref<16x128xf32, #tpu.memory_space<vmem>>, vector<16x128xf32>
    tpu.vector_store %arg5[%c0_10, %c0_11], %11 {strides = array<i32>} : memref<16x128xf32, #tpu.memory_space<vmem>>, vector<16x128xf32>,
    %cst_12 = arith.constant 2.000000e+00 : f32
    %13 = vector.broadcast %cst_12 : f32 to vector<16x128xf32>
    %14 = arith.cmpf ogt, %0, %13 : vector<16x128xf32>
    %c0_13 = arith.constant 0 : index
    %c0_14 = arith.constant 0 : index
    %15 = vector.load %arg6[%c0_13, %c0_14] : memref<16x128xi32, #tpu.memory_space<vmem>>, vector<16x128xi32>
    %16 = arith.extui %14 : vector<16x128xi1> to vector<16x128xi32>
    %cst_15 = arith.constant dense<0> : vector<16x128xi32>
    %17 = arith.cmpi ne, %15, %cst_15 : vector<16x128xi32>
    tpu.vector_store %arg6[%c0_13, %c0_14], %16 {strides = array<i32>} : memref<16x128xi32, #tpu.memory_space<vmem>>, vector<16x128xi32>,
    return
  }
  func.func @transform_0(%arg0: i32) -> (i32, i32) {
    %c0_i32 = arith.constant 0 : i32
    %c0_i32_0 = arith.constant 0 : i32
    return %arg0, %c0_i32 : i32, i32
  }
  func.func @transform_1(%arg0: i32) -> (i32, i32) {
    %c0_i32 = arith.constant 0 : i32
    %c0_i32_0 = arith.constant 0 : i32
    return %arg0, %c0_i32 : i32, i32
  }
  func.func @transform_2(%arg0: i32) -> (i32, i32) {
    %c0_i32 = arith.constant 0 : i32
    %c0_i32_0 = arith.constant 0 : i32
    return %arg0, %c0_i32 : i32, i32
  }
  func.func @transform_3(%arg0: i32) -> (i32, i32) {
    %c0_i32 = arith.constant 0 : i32
    %c0_i32_0 = arith.constant 0 : i32
    return %arg0, %c0_i32 : i32, i32
  }
  func.func @transform_4(%arg0: i32) -> (i32, i32) {
    %c0_i32 = arith.constant 0 : i32
    %c0_i32_0 = arith.constant 0 : i32
    return %arg0, %c0_i32 : i32, i32
  }
  func.func @transform_5(%arg0: i32) -> (i32, i32) {
    %c0_i32 = arith.constant 0 : i32
    %c0_i32_0 = arith.constant 0 : i32
    return %arg0, %c0_i32 : i32, i32
  }
}

module attributes {stable_mosaic.version = 11 : i64} {
  func.func @kernel(%arg0: i32, %arg1: memref<16x128xf32, #tpu.memory_space<vmem>>, %arg2: memref<16x128xf32, #tpu.memory_space<vmem>>, %arg3: memref<16x128xf32, #tpu.memory_space<vmem>>, %arg4: memref<16x128xf32, #tpu.memory_space<vmem>>, %arg5: memref<16x128xf32, #tpu.memory_space<vmem>>, %arg6: memref<16x128xi8, #tpu.memory_space<vmem>>) attributes {dimension_semantics = [#tpu.dimension_semantics<parallel>], iteration_bounds = array<i64: 1>, scalar_prefetch = 0 : i64, scratch_operands = 0 : i64, tpu.core_type = #tpu.core_type<tc>, window_params = [{transform_indices = @transform_0, window_bounds = array<i64: 16, 128>}, {transform_indices = @transform_1, window_bounds = array<i64: 16, 128>}, {transform_indices = @transform_2, window_bounds = array<i64: 16, 128>}, {transform_indices = @transform_3, window_bounds = array<i64: 16, 128>}, {transform_indices = @transform_4, window_bounds = array<i64: 16, 128>}, {transform_indices = @transform_5, window_bounds = array<i64: 16, 128>}]} {
    %c0 = arith.constant 0 : index
    %c0_0 = arith.constant 0 : index
    %0 = vector.load %arg1[%c0, %c0_0] : memref<16x128xf32, #tpu.memory_space<vmem>>, vector<16x128xf32>
    %cst = arith.constant 5.000000e+00 : f32
    %1 = vector.broadcast %cst : f32 to vector<16x128xf32>
    %2 = arith.addf %0, %1 : vector<16x128xf32>
    %c0_1 = arith.constant 0 : index
    %c0_2 = arith.constant 0 : index
    %3 = vector.load %arg2[%c0_1, %c0_2] : memref<16x128xf32, #tpu.memory_space<vmem>>, vector<16x128xf32>
    tpu.vector_store %arg2[%c0_1, %c0_2], %2 {strides = array<i32>} : memref<16x128xf32, #tpu.memory_space<vmem>>, vector<16x128xf32>,
    %cst_3 = arith.constant 3.000000e+00 : f32
    %4 = vector.broadcast %cst_3 : f32 to vector<16x128xf32>
    %5 = arith.subf %0, %4 : vector<16x128xf32>
    %c0_4 = arith.constant 0 : index
    %c0_5 = arith.constant 0 : index
    %6 = vector.load %arg3[%c0_4, %c0_5] : memref<16x128xf32, #tpu.memory_space<vmem>>, vector<16x128xf32>
    tpu.vector_store %arg3[%c0_4, %c0_5], %5 {strides = array<i32>} : memref<16x128xf32, #tpu.memory_space<vmem>>, vector<16x128xf32>,
    %cst_6 = arith.constant 2.000000e+00 : f32
    %7 = vector.broadcast %cst_6 : f32 to vector<16x128xf32>
    %8 = arith.mulf %0, %7 : vector<16x128xf32>
    %c0_7 = arith.constant 0 : index
    %c0_8 = arith.constant 0 : index
    %9 = vector.load %arg4[%c0_7, %c0_8] : memref<16x128xf32, #tpu.memory_space<vmem>>, vector<16x128xf32>
    tpu.vector_store %arg4[%c0_7, %c0_8], %8 {strides = array<i32>} : memref<16x128xf32, #tpu.memory_space<vmem>>, vector<16x128xf32>,
    %cst_9 = arith.constant 2.500000e-01 : f32
    %10 = vector.broadcast %cst_9 : f32 to vector<16x128xf32>
    %11 = arith.mulf %0, %10 : vector<16x128xf32>
    %c0_10 = arith.constant 0 : index
    %c0_11 = arith.constant 0 : index
    %12 = vector.load %arg5[%c0_10, %c0_11] : memref<16x128xf32, #tpu.memory_space<vmem>>, vector<16x128xf32>
    tpu.vector_store %arg5[%c0_10, %c0_11], %11 {strides = array<i32>} : memref<16x128xf32, #tpu.memory_space<vmem>>, vector<16x128xf32>,
    %cst_12 = arith.constant 2.000000e+00 : f32
    %13 = vector.broadcast %cst_12 : f32 to vector<16x128xf32>
    %14 = arith.cmpf ogt, %0, %13 : vector<16x128xf32>
    %15 = arith.extui %14 : vector<16x128xi1> to vector<16x128xi8>
    %c0_13 = arith.constant 0 : index
    %c0_14 = arith.constant 0 : index
    %16 = vector.load %arg6[%c0_13, %c0_14] : memref<16x128xi8, #tpu.memory_space<vmem>>, vector<16x128xi8>
    tpu.vector_store %arg6[%c0_13, %c0_14], %15 {strides = array<i32>} : memref<16x128xi8, #tpu.memory_space<vmem>>, vector<16x128xi8>,
    return
  }
  func.func @transform_0(%arg0: i32) -> (i32, i32) {
    %c0_i32 = arith.constant 0 : i32
    %c0_i32_0 = arith.constant 0 : i32
    return %arg0, %c0_i32 : i32, i32
  }
  func.func @transform_1(%arg0: i32) -> (i32, i32) {
    %c0_i32 = arith.constant 0 : i32
    %c0_i32_0 = arith.constant 0 : i32
    return %arg0, %c0_i32 : i32, i32
  }
  func.func @transform_2(%arg0: i32) -> (i32, i32) {
    %c0_i32 = arith.constant 0 : i32
    %c0_i32_0 = arith.constant 0 : i32
    return %arg0, %c0_i32 : i32, i32
  }
  func.func @transform_3(%arg0: i32) -> (i32, i32) {
    %c0_i32 = arith.constant 0 : i32
    %c0_i32_0 = arith.constant 0 : i32
    return %arg0, %c0_i32 : i32, i32
  }
  func.func @transform_4(%arg0: i32) -> (i32, i32) {
    %c0_i32 = arith.constant 0 : i32
    %c0_i32_0 = arith.constant 0 : i32
    return %arg0, %c0_i32 : i32, i32
  }
  func.func @transform_5(%arg0: i32) -> (i32, i32) {
    %c0_i32 = arith.constant 0 : i32
    %c0_i32_0 = arith.constant 0 : i32
    return %arg0, %c0_i32 : i32, i32
  }
}

</mosaic_0001>

<bundles_post_ra>
// kernel: tpu_custom_call.1
= control target key start
LH: loop header
LB: loop body
LE: loop exit
PB: predicated region body
PF: predicated region fallthrough
CT: control target
= control target key end

     0   :  { %11 = vsyncpa [#allocation3], 0  ;;  %s337_s0 = inlined_call_operand.hbm [shape: f32[16,128], index: 0, kind: input, shape index: {}]   ;;  %s338_s1 = inlined_call_operand.hbm [shape: f32[16,128], index: 1, kind: output, shape index: {0}]   ;;  %s339_s2 = inlined_call_operand.hbm [shape: f32[16,128], index: 2, kind: output, shape index: {1}]   ;;  %s340_s3 = inlined_call_operand.hbm [shape: f32[16,128], index: 3, kind: output, shape index: {2}]   ;;  %s341_s4 = inlined_call_operand.hbm [shape: f32[16,128], index: 4, kind: output, shape index: {3}]   ;;  %s342_s5 = inlined_call_operand.vmem [shape: s32[16,128], index: 5, kind: output, shape index: {4}]  }
   0x1   :  { %12 = vsyncpa [#allocation4], 0 }
   0x2   :  { %13 = vsyncpa [#allocation7], 0 }
   0x3   :  { %14 = vsyncpa [#allocation10], 0  ;;  %s240_s18 = smov [#allocation2]  }
   0x4   :  { %s20_s19 = sshll.u32 %s240_s18, 4  ;;  %s21_s19 = int_to_ptr.vmem [resolvable:$true] %s20_s19 }
   0x5   :  { %s140_s20 = scalar_lea.vmem %s21_s19, 256  ;;  %p145_p1 = scmp.lt.s32.totalorder %s21_s19, %s21_s19 }
   0x6   :  { %p141_p0 = scmp.ne.s32.totalorder %s21_s19, %s140_s20  ;;  %p146_p2 = scmp.lt.s32.totalorder %s140_s20, %s140_s20 }
   0x8   :  { %p147_p3 = por %p146_p2, %p145_p1 }
   0xa   :  { %p148_p4 = pnand %p147_p3, %p141_p0 }
   0xc   :  { %151 = shalt.err (!%p148_p4)
}
   0xd   :  { %s241_s21 = smov 128   ;;  %s242_s22 = smov 8  }
   0xe   :  { %26 = dma.hbm_to_vmem [thread:$0]  %s337_s0, 256, %s21_s19, [#allocation3], %s241_s21, %s241_s21, %s242_s22  }
   0xf   :  { %232 = dma.done.wait [#allocation3], 256  }
  0x10   :  { %233 = vsyncadd [#allocation3], 4294967040  ;;  %s243_s25 = smov [#allocation6]   ;;  %s244_s27 = smov [#allocation5]   ;;  %v30_v0 = vld [vmem:[#allocation2] sm:$0xff]  ;;  %v31_v1 = vld [vmem:[#allocation2 + $0x8] sm:$0xff] }
  0x11   :  { %s71_s26 = sshll.u32 %s243_s25, 4  ;;  %s59_s28 = sshll.u32 %s244_s27, 4  ;;  %v122_v2 = vadd.f32 -3.0, %v30_v0  ;;  %v123_v3 = vadd.f32 -3.0, %v31_v1  ;;  %v32_v4 = vadd.f32 5.0, %v30_v0  ;;  %v33_v5 = vadd.f32 5.0, %v31_v1  ;;  %s72_s26 = int_to_ptr.vmem [resolvable:$true] %s71_s26  ;;  %s284_s28 = int_to_ptr.vmem [resolvable:$true] %s59_s28 }
  0x12   :  { %s245_s29 = smov [#allocation8]   ;;  %s246_s6 = smov [#allocation9]   ;;  %v40_v6 = vmul.f32 2.0, %v30_v0  ;;  %v41_v7 = vmul.f32 2.0, %v31_v1  ;;  %v44_v8 = vmul.f32 0.25, %v30_v0  ;;  %v45_v9 = vmul.f32 0.25, %v31_v1 }
  0x13   :  { %s83_s30 = sshll.u32 %s245_s29, 4  ;;  %s95_s7 = sshll.u32 %s246_s6, 4  ;;  %38 = vst [vmem:[#allocation6] sm:$0xff] %v122_v2  ;;  %39 = vst [vmem:[#allocation6 + $0x8] sm:$0xff] %v123_v3  ;;  %vm48_vm0 = vcmp.gt.f32.partialorder %v30_v0, 2.0  ;;  %vm49_vm1 = vcmp.gt.f32.partialorder %v31_v1, 2.0  ;;  %s286_s30 = int_to_ptr.vmem [resolvable:$true] %s83_s30  ;;  %s288_s7 = int_to_ptr.vmem [resolvable:$true] %s95_s7 }
  0x14   :  { %34 = vst [vmem:[#allocation5] sm:$0xff] %v32_v4  ;;  %35 = vst [vmem:[#allocation5 + $0x8] sm:$0xff] %v33_v5  ;;  %s152_s0 = scalar_lea.vmem %s72_s26, 256  ;;  %p157_p6 = scmp.lt.s32.totalorder %s72_s26, %s72_s26 }
  0x15   :  { %42 = vst [vmem:[#allocation8] sm:$0xff] %v40_v6  ;;  %43 = vst [vmem:[#allocation8 + $0x8] sm:$0xff] %v41_v7  ;;  %p153_p5 = scmp.ne.s32.totalorder %s72_s26, %s152_s0  ;;  %p158_p7 = scmp.lt.s32.totalorder %s152_s0, %s152_s0 }
  0x16   :  { %46 = vst [vmem:[#allocation9] sm:$0xff] %v44_v8  ;;  %47 = vst [vmem:[#allocation9 + $0x8] sm:$0xff] %v45_v9 }
  0x17   :  { %p159_p8 = por %p158_p7, %p157_p6 }
  0x19   :  { %p160_p9 = pnand %p159_p8, %p153_p5 }
  0x1b   :  { %163 = shalt.err (!%p160_p9)
}
  0x1c   :  { %77 = dma.vmem_to_hbm [thread:$0]  %s72_s26, 256, %s339_s2, [#allocation7], %s241_s21, %s241_s21, %s242_s22   ;;  %v247_v10 = vmov 0  }
  0x1d   :  { %v50_v11 = vsel %vm48_vm0, 1, %v247_v10  ;;  %v51_v12 = vsel %vm49_vm1, 1, %v247_v10  ;;  %s172_s14 = scalar_lea.vmem %s284_s28, 256  ;;  %p177_p11 = scmp.lt.s32.totalorder %s284_s28, %s284_s28 }
  0x1e   :  { %52 = vst [vmem:[%s342_s5] sm:$0xff] %v50_v11  ;;  %53 = vst [vmem:[%s342_s5 + $0x8] sm:$0xff] %v51_v12  ;;  %p173_p10 = scmp.ne.s32.totalorder %s284_s28, %s172_s14  ;;  %p178_p12 = scmp.lt.s32.totalorder %s172_s14, %s172_s14 }
  0x20   :  { %p179_p13 = por %p178_p12, %p177_p11 }
  0x22   :  { %p180_p0 = pnand %p179_p13, %p173_p10 }
  0x24   :  { %183 = shalt.err (!%p180_p0)
}
  0x25   :  { %65 = dma.vmem_to_hbm [thread:$0]  %s284_s28, 256, %s338_s1, [#allocation4], %s241_s21, %s241_s21, %s242_s22  }
  0x26   :  { %s192_s5 = scalar_lea.vmem %s286_s30, 256  ;;  %p197_p2 = scmp.lt.s32.totalorder %s286_s30, %s286_s30 }
  0x27   :  { %p193_p1 = scmp.ne.s32.totalorder %s286_s30, %s192_s5  ;;  %p198_p3 = scmp.lt.s32.totalorder %s192_s5, %s192_s5 }
  0x29   :  { %p199_p4 = por %p198_p3, %p197_p2 }
  0x2b   :  { %p200_p5 = pnand %p199_p4, %p193_p1 }
  0x2d   :  { %203 = shalt.err (!%p200_p5)
}
  0x2e   :  { %89 = dma.vmem_to_hbm [thread:$0]  %s286_s30, 256, %s340_s3, [#allocation7], %s241_s21, %s241_s21, %s242_s22  }
  0x2f   :  { %s212_s1 = scalar_lea.vmem %s288_s7, 256  ;;  %p217_p7 = scmp.lt.s32.totalorder %s288_s7, %s288_s7 }
  0x30   :  { %p213_p6 = scmp.ne.s32.totalorder %s288_s7, %s212_s1  ;;  %p218_p8 = scmp.lt.s32.totalorder %s212_s1, %s212_s1 }
  0x32   :  { %p219_p9 = por %p218_p8, %p217_p7 }
  0x34   :  { %p220_p10 = pnand %p219_p9, %p213_p6 }
  0x36   :  { %223 = shalt.err (!%p220_p10)
}
  0x37   :  { %101 = dma.vmem_to_hbm [thread:$0]  %s288_s7, 256, %s341_s4, [#allocation10], %s241_s21, %s241_s21, %s242_s22  }
  0x38   :  { %234 = dma.done.wait [#allocation4], 256  }
  0x39   :  { %235 = vsyncadd [#allocation4], 4294967040 }
  0x3a   :  { %236 = dma.done.wait [#allocation7], 512  }
  0x3b   :  { %237 = vsyncadd [#allocation7], 4294966784 }
  0x3c   :  { %238 = dma.done.wait [#allocation10], 256  }
  0x3d   :  { %239 = vsyncadd [#allocation10], 4294967040 }
  0x3e   :  { %118 = vsyncpa [#allocation3], 1 }
  0x3f   :  { %119 = vsyncpa [#allocation4], 1 }
  0x40   :  { %120 = vsyncpa [#allocation7], 1 }
  0x41   :  { %121 = vsyncpa [#allocation10], 1 }

// kernel: tpu_custom_call.1
= control target key start
LH: loop header
LB: loop body
LE: loop exit
PB: predicated region body
PF: predicated region fallthrough
CT: control target
= control target key end

     0   :  { %11 = vsyncpa [#allocation3], 0  ;;  %s392_s0 = inlined_call_operand.hbm [shape: f32[16,128], index: 0, kind: input, shape index: {}]   ;;  %s393_s1 = inlined_call_operand.hbm [shape: f32[16,128], index: 1, kind: output, shape index: {0}]   ;;  %s394_s2 = inlined_call_operand.hbm [shape: f32[16,128], index: 2, kind: output, shape index: {1}]   ;;  %s395_s3 = inlined_call_operand.hbm [shape: f32[16,128], index: 3, kind: output, shape index: {2}]   ;;  %s396_s4 = inlined_call_operand.hbm [shape: f32[16,128], index: 4, kind: output, shape index: {3}]   ;;  %s397_s5 = inlined_call_operand.hbm [shape: u8[16,128], index: 5, kind: output, shape index: {4}]  }
   0x1   :  { %12 = vsyncpa [#allocation4], 0 }
   0x2   :  { %13 = vsyncpa [#allocation7], 0 }
   0x3   :  { %14 = vsyncpa [#allocation10], 0  ;;  %s283_s18 = smov [#allocation2]  }
   0x4   :  { %s20_s19 = sshll.u32 %s283_s18, 4  ;;  %s21_s19 = int_to_ptr.vmem [resolvable:$true] %s20_s19 }
   0x5   :  { %s163_s20 = scalar_lea.vmem %s21_s19, 256  ;;  %p168_p1 = scmp.lt.s32.totalorder %s21_s19, %s21_s19 }
   0x6   :  { %p164_p0 = scmp.ne.s32.totalorder %s21_s19, %s163_s20  ;;  %p169_p2 = scmp.lt.s32.totalorder %s163_s20, %s163_s20 }
   0x8   :  { %p170_p3 = por %p169_p2, %p168_p1 }
   0xa   :  { %p171_p4 = pnand %p170_p3, %p164_p0 }
   0xc   :  { %174 = shalt.err (!%p171_p4)
}
   0xd   :  { %s284_s21 = smov 128   ;;  %s285_s22 = smov 8  }
   0xe   :  { %26 = dma.hbm_to_vmem [thread:$0]  %s392_s0, 256, %s21_s19, [#allocation3], %s284_s21, %s284_s21, %s285_s22  }
   0xf   :  { %275 = dma.done.wait [#allocation3], 256  }
  0x10   :  { %276 = vsyncadd [#allocation3], 4294967040  ;;  %s286_s25 = smov [#allocation6]   ;;  %s287_s27 = smov [#allocation9]   ;;  %v32_v0 = vld [vmem:[#allocation2] sm:$0xff]  ;;  %v33_v1 = vld [vmem:[#allocation2 + $0x8] sm:$0xff] }
  0x11   :  { %s80_s26 = sshll.u32 %s286_s25, 4  ;;  %s104_s28 = sshll.u32 %s287_s27, 4  ;;  %v142_v2 = vadd.f32 -3.0, %v32_v0  ;;  %v143_v3 = vadd.f32 -3.0, %v33_v1  ;;  %v46_v4 = vmul.f32 0.25, %v32_v0  ;;  %v47_v5 = vmul.f32 0.25, %v33_v1  ;;  %s330_s26 = int_to_ptr.vmem [resolvable:$true] %s80_s26  ;;  %s332_s28 = int_to_ptr.vmem [resolvable:$true] %s104_s28 }
  0x12   :  { %s288_s29 = smov [#allocation5]   ;;  %s289_s6 = smov [#allocation8]   ;;  %v34_v6 = vadd.f32 5.0, %v32_v0  ;;  %v35_v7 = vadd.f32 5.0, %v33_v1  ;;  %v42_v8 = vmul.f32 2.0, %v32_v0  ;;  %v43_v9 = vmul.f32 2.0, %v33_v1 }
  0x13   :  { %s68_s30 = sshll.u32 %s288_s29, 4  ;;  %s92_s7 = sshll.u32 %s289_s6, 4  ;;  %40 = vst [vmem:[#allocation6] sm:$0xff] %v142_v2  ;;  %41 = vst [vmem:[#allocation6 + $0x8] sm:$0xff] %v143_v3  ;;  %vm50_vm0 = vcmp.gt.f32.partialorder %v32_v0, 2.0  ;;  %vm51_vm1 = vcmp.gt.f32.partialorder %v33_v1, 2.0  ;;  %s334_s30 = int_to_ptr.vmem [resolvable:$true] %s68_s30  ;;  %s336_s7 = int_to_ptr.vmem [resolvable:$true] %s92_s7 }
  0x14   :  { %48 = vst [vmem:[#allocation9] sm:$0xff] %v46_v4  ;;  %49 = vst [vmem:[#allocation9 + $0x8] sm:$0xff] %v47_v5  ;;  %s175_s0 = scalar_lea.vmem %s330_s26, 256  ;;  %p180_p6 = scmp.lt.s32.totalorder %s330_s26, %s330_s26 }
  0x15   :  { %36 = vst [vmem:[#allocation5] sm:$0xff] %v34_v6  ;;  %37 = vst [vmem:[#allocation5 + $0x8] sm:$0xff] %v35_v7  ;;  %p176_p5 = scmp.ne.s32.totalorder %s330_s26, %s175_s0  ;;  %p181_p7 = scmp.lt.s32.totalorder %s175_s0, %s175_s0 }
  0x16   :  { %44 = vst [vmem:[#allocation8] sm:$0xff] %v42_v8  ;;  %45 = vst [vmem:[#allocation8 + $0x8] sm:$0xff] %v43_v9 }
  0x17   :  { %vm338_vm2 = vmpackc.low %vm51_vm1, %vm50_vm0  ;;  %p182_p8 = por %p181_p7, %p180_p6 }
  0x19   :  { %p183_p9 = pnand %p182_p8, %p176_p5 }
  0x1b   :  { %186 = shalt.err (!%p183_p9)
}
  0x1c   :  { %86 = dma.vmem_to_hbm [thread:$0]  %s330_s26, 256, %s394_s2, [#allocation7], %s284_s21, %s284_s21, %s285_s22   ;;  %vm53_vm3 = vmpackc.even %vm338_vm2, %vm338_vm2 }
  0x1d   :  { %s195_s10 = scalar_lea.vmem %s332_s28, 256  ;;  %p200_p11 = scmp.lt.s32.totalorder %s332_s28, %s332_s28 }
  0x1e   :  { %p196_p10 = scmp.ne.s32.totalorder %s332_s28, %s195_s10  ;;  %p201_p12 = scmp.lt.s32.totalorder %s195_s10, %s195_s10 }
  0x20   :  { %p202_p13 = por %p201_p12, %p200_p11 }
  0x22   :  { %p203_p0 = pnand %p202_p13, %p196_p10 }
  0x24   :  { %206 = shalt.err (!%p203_p0)
}
  0x25   :  { %110 = dma.vmem_to_hbm [thread:$0]  %s332_s28, 256, %s396_s4, [#allocation10], %s284_s21, %s284_s21, %s285_s22   ;;  %v290_v11 = vmov 0  }
  0x26   :  { %v54_v12 = vsel %vm53_vm3, 16843009, %v290_v11  ;;  %s215_s2 = scalar_lea.vmem %s334_s30, 256  ;;  %p220_p2 = scmp.lt.s32.totalorder %s334_s30, %s334_s30 }
  0x27   :  { %p216_p1 = scmp.ne.s32.totalorder %s334_s30, %s215_s2  ;;  %p221_p3 = scmp.lt.s32.totalorder %s215_s2, %s215_s2 }
  0x29   :  { %p222_p4 = por %p221_p3, %p220_p2 }
  0x2b   :  { %p223_p5 = pnand %p222_p4, %p216_p1 }
  0x2d   :  { %226 = shalt.err (!%p223_p5)
}
  0x2e   :  { %74 = dma.vmem_to_hbm [thread:$0]  %s334_s30, 256, %s393_s1, [#allocation4], %s284_s21, %s284_s21, %s285_s22   ;;  %v55_v13 = vunpack.c.0.s8 %v54_v12  ;;  %v56_v14 = vunpack.c.1.s8 %v54_v12 }
  0x2f   :  { %s235_s4 = scalar_lea.vmem %s336_s7, 256  ;;  %p240_p7 = scmp.lt.s32.totalorder %s336_s7, %s336_s7 }
  0x30   :  { %p236_p6 = scmp.ne.s32.totalorder %s336_s7, %s235_s4  ;;  %p241_p8 = scmp.lt.s32.totalorder %s235_s4, %s235_s4 }
  0x32   :  { %p242_p9 = por %p241_p8, %p240_p7 }
  0x34   :  { %p243_p10 = pnand %p242_p9, %p236_p6 }
  0x36   :  { %246 = shalt.err (!%p243_p10)
}
  0x37   :  { %98 = dma.vmem_to_hbm [thread:$0]  %s336_s7, 256, %s395_s3, [#allocation7], %s284_s21, %s284_s21, %s285_s22   ;;  %v57_v15 = vpack.c.b16 %v55_v13, %v55_v13  ;;  %v59_v16 = vpack.c.b16 %v56_v14, %v56_v14 }
  0x38   :  { %s291_s17 = smov [#allocation11]  }
  0x39   :  { %s116_s1 = sshll.u32 %s291_s17, 4  ;;  %v58_v17 = vpack.c.b8 %v57_v15, %v57_v15  ;;  %v60_v18 = vpack.c.b8 %v59_v16, %v59_v16  ;;  %s117_s1 = int_to_ptr.vmem [resolvable:$true] %s116_s1 }
  0x3a   :  { %s255_s18 = scalar_lea.vmem %s117_s1, 64  ;;  %p260_p12 = scmp.lt.s32.totalorder %s117_s1, %s117_s1 }
  0x3b   :  { %61 = vst [vmem:[#allocation11] sm:$0x3] %v58_v17  ;;  %62 = vst [vmem:[#allocation11 + $0x2] sm:$0x3] %v60_v18  ;;  %p256_p11 = scmp.ne.s32.totalorder %s117_s1, %s255_s18  ;;  %p261_p13 = scmp.lt.s32.totalorder %s255_s18, %s255_s18 }
  0x3d   :  { %p262_p0 = por %p261_p13, %p260_p12 }
  0x3f   :  { %p263_p1 = pnand %p262_p0, %p256_p11 }
  0x41   :  { %266 = shalt.err (!%p263_p1)
}
  0x42   :  { %s292_s19 = smov 32   ;;  %s293_s20 = smov 2  }
  0x43   :  { %122 = dma.vmem_to_hbm [thread:$0]  %s117_s1, 64, %s397_s5, [#allocation10], %s292_s19, %s292_s19, %s293_s20  }
  0x44   :  { %277 = dma.done.wait [#allocation4], 256  }
  0x45   :  { %278 = vsyncadd [#allocation4], 4294967040 }
  0x46   :  { %279 = dma.done.wait [#allocation7], 512  }
  0x47   :  { %280 = vsyncadd [#allocation7], 4294966784 }
  0x48   :  { %281 = dma.done.wait [#allocation10], 320  }
  0x49   :  { %282 = vsyncadd [#allocation10], 4294966976 }
  0x4a   :  { %138 = vsyncpa [#allocation3], 1 }
  0x4b   :  { %139 = vsyncpa [#allocation4], 1 }
  0x4c   :  { %140 = vsyncpa [#allocation7], 1 }
  0x4d   :  { %141 = vsyncpa [#allocation10], 1 }

</bundles_post_ra>
